<compile_context>
chip_gen: v5e
topology: v5e:2x2
jax: 0.10.0
libtpu: 0.0.40
codegen_flags: <defaults>
</compile_context>

<pallas_src>
import jax
import jax.numpy as jnp
from jax.experimental import pallas as pl
from jax.experimental.pallas import tpu as pltpu


def _arl_kernel(x_ref, w_ref, proj_ref, attn_ref, rep_ref):
    # x_ref   : (tb, L, E)   docIn batch tile (native dtype)
    # w_ref   : (1, 1, E)    w_a = aspProj[a] @ aspEmbed[a]   (f32)
    # proj_ref: (1, E, h1)   aspProj[a]
    # attn_ref: (tb, A, L)   batch-major attention output block (resident over a)
    # rep_ref : (tb, A, h1)  batch-major aspect-rep output block (resident over a)
    a = pl.program_id(1)

    x = x_ref[...]                                  # (tb, L, E) native dtype
    w = w_ref[...].astype(jnp.float32)              # (1, 1, E)

    # logits_{b,l} = sum_E x_{b,l,e} * w_e   (VPU multiply + lane reduction; no MXU matvec)
    logits = jnp.sum(x * w, axis=-1)                # (tb, L) f32

    # softmax over the document-length axis (dim=1 in the PyTorch module)
    m = jnp.max(logits, axis=-1, keepdims=True)
    p = jnp.exp(logits - m)
    denom = jnp.sum(p, axis=-1, keepdims=True)
    attn = p * pl.reciprocal(denom, approx=False)   # (tb, L) f32, rows sum to 1

    # rep = ((attn @ x) @ proj)  ==  sum_L attn_{b,l} * (x_{b,l,:} @ proj)   (re-associated)
    pooled = jnp.sum(x * attn[:, :, None], axis=1)  # (tb, E) f32
    proj = proj_ref[0].astype(jnp.float32)          # (E, h1)
    rep = jnp.dot(pooled, proj,
                  preferred_element_type=jnp.float32)   # (tb, h1)

    # batch-major writes into the resident output block for aspect `a`
    attn_ref[:, pl.ds(a, 1), :] = attn[:, None, :].astype(attn_ref.dtype)
    rep_ref[:, pl.ds(a, 1), :] = rep[:, None, :].astype(rep_ref.dtype)


def anr_arl_forward(batch_docIn, aspProj, aspEmbed, *, batch_tile=None):
    """ANR_ARL forward (ctx_win_size == 1).

    batch_docIn: (bsz, L, E); aspProj: (A, E, h1); aspEmbed: (A, h1)
    Returns (batch_aspAttn (bsz, A, L), batch_aspRep (bsz, A, h1)).
    """
    bsz, L, E = batch_docIn.shape
    A, _, h1 = aspProj.shape
    out_dtype = batch_docIn.dtype

    # Precompute w_a = aspProj[a] @ aspEmbed[a] for all aspects (tiny, done once by XLA).
    w = jnp.einsum("aeh,ah->ae",
                   aspProj.astype(jnp.float32),
                   aspEmbed.astype(jnp.float32))          # (A, E)
    w3 = w.reshape(A, 1, E)                               # lane-dense per-aspect block

    # Batch tile sized so a docIn tile stays well inside scoped VMEM (double-buffered).
    if batch_tile is None:
        bytes_per_batch_row = L * E * batch_docIn.dtype.itemsize
        budget = 8 * 1024 * 1024                          # per docIn buffer
        batch_tile = max(1, min(bsz, budget // max(1, bytes_per_batch_row)))
    tb = int(min(batch_tile, bsz))
    nb = pl.cdiv(bsz, tb)

    attn_out, rep_out = pl.pallas_call(
        _arl_kernel,
        out_shape=(
            jax.ShapeDtypeStruct((bsz, A, L), out_dtype),
            jax.ShapeDtypeStruct((bsz, A, h1), out_dtype),
        ),
        grid_spec=pltpu.PrefetchScalarGridSpec(
            num_scalar_prefetch=0,
            grid=(nb, A),                                  # batch tiles outer, aspects inner
            in_specs=[
                pl.BlockSpec((tb, L, E), lambda i, a: (i, 0, 0)),   # docIn tile (reused over a)
                pl.BlockSpec((1, 1, E), lambda i, a: (a, 0, 0)),    # w_a
                pl.BlockSpec((1, E, h1), lambda i, a: (a, 0, 0)),   # aspProj[a]
            ],
            out_specs=[
                # Output blocks are invariant in `a` -> stay resident across the aspect
                # loop and are written back to HBM once per batch tile (batch-major).
                pl.BlockSpec((tb, A, L), lambda i, a: (i, 0, 0)),
                pl.BlockSpec((tb, A, h1), lambda i, a: (i, 0, 0)),
            ],
        ),
        compiler_params=pltpu.CompilerParams(
            dimension_semantics=("parallel", "arbitrary")),
    )(batch_docIn, w3, aspProj)

    return attn_out, rep_out


def _reference(batch_docIn, aspProj, aspEmbed):
    # Pure-JAX reference mirroring the PyTorch loop (ctx_win_size == 1).
    attns, reps = [], []
    A = aspProj.shape[0]
    for a in range(A):
        proj_doc = jnp.matmul(batch_docIn, aspProj[a])            # (bsz, L, h1)
        logits = jnp.matmul(proj_doc, aspEmbed[a][:, None])       # (bsz, L, 1)
        attn = jax.nn.softmax(logits, axis=1)                     # (bsz, L, 1)
        rep = jnp.sum(proj_doc * attn, axis=1)                    # (bsz, h1)
        attns.append(jnp.transpose(attn, (0, 2, 1)))              # (bsz, 1, L)
        reps.append(rep[:, None, :])                              # (bsz, 1, h1)
    return jnp.concatenate(attns, axis=1), jnp.concatenate(reps, axis=1)


if __name__ == "__main__":
    # Small, module-consistent shapes.
    bsz = 2            # batch size
    max_doc_len = 16   # L
    word_embed_dim = 32
    h1 = 8
    num_aspects = 4
    ctx_win_size = 1

    key = jax.random.PRNGKey(0)
    k_x, k_proj, k_emb = jax.random.split(key, 3)

    batch_docIn = jax.random.normal(
        k_x, (bsz, max_doc_len, word_embed_dim), dtype=jnp.float32)
    # Deterministic parameter init: uniform(-0.01, 0.01), same as the module.
    aspProj = jax.random.uniform(
        k_proj, (num_aspects, word_embed_dim, h1),
        minval=-0.01, maxval=0.01, dtype=jnp.float32)
    aspEmbed = jax.random.uniform(
        k_emb, (num_aspects, ctx_win_size * h1),
        minval=-0.01, maxval=0.01, dtype=jnp.float32)

    attn, rep = anr_arl_forward(batch_docIn, aspProj, aspEmbed)
    attn, rep = jax.block_until_ready((attn, rep))

    ref_attn, ref_rep = _reference(batch_docIn, aspProj, aspEmbed)
    assert attn.shape == (bsz, num_aspects, max_doc_len)
    assert rep.shape == (bsz, num_aspects, h1)
    assert jnp.allclose(attn, ref_attn, atol=1e-5, rtol=1e-5)
    assert jnp.allclose(rep, ref_rep, atol=1e-5, rtol=1e-5)

    print("KERNEL_OK")
</pallas_src>

<mosaic_0001>
module attributes {stable_mosaic.version = 11 : i64} {
  func.func @_arl_kernel(%arg0: i32, %arg1: i32, %arg2: memref<2x16x32xf32, #tpu.memory_space<vmem>>, %arg3: memref<1x1x32xf32, #tpu.memory_space<vmem>>, %arg4: memref<1x32x8xf32, #tpu.memory_space<vmem>>, %arg5: memref<2x4x16xf32, #tpu.memory_space<vmem>>, %arg6: memref<2x4x8xf32, #tpu.memory_space<vmem>>) attributes {dimension_semantics = [#tpu.dimension_semantics<parallel>, #tpu.dimension_semantics<arbitrary>], iteration_bounds = array<i64: 1, 4>, scalar_prefetch = 0 : i64, scratch_operands = 0 : i64, tpu.core_type = #tpu.core_type<tc>, window_params = [{transform_indices = @transform_0, window_bounds = array<i64: 2, 16, 32>}, {transform_indices = @transform_1, window_bounds = array<i64: 1, 1, 32>}, {transform_indices = @transform_2, window_bounds = array<i64: 1, 32, 8>}, {transform_indices = @transform_3, window_bounds = array<i64: 2, 4, 16>}, {transform_indices = @transform_4, window_bounds = array<i64: 2, 4, 8>}]} {
    %c0 = arith.constant 0 : index
    %c0_0 = arith.constant 0 : index
    %c0_1 = arith.constant 0 : index
    %0 = vector.load %arg2[%c0, %c0_0, %c0_1] : memref<2x16x32xf32, #tpu.memory_space<vmem>>, vector<2x16x32xf32>
    %c0_2 = arith.constant 0 : index
    %c0_3 = arith.constant 0 : index
    %c0_4 = arith.constant 0 : index
    %1 = vector.load %arg3[%c0_2, %c0_3, %c0_4] : memref<1x1x32xf32, #tpu.memory_space<vmem>>, vector<1x1x32xf32>
    %2 = vector.broadcast %1 : vector<1x1x32xf32> to vector<2x16x32xf32>
    %3 = arith.mulf %0, %2 : vector<2x16x32xf32>
    %cst = arith.constant dense<0.000000e+00> : vector<2x16xf32>
    %4 = vector.multi_reduction <add>, %3, %cst [2] : vector<2x16x32xf32> to vector<2x16xf32>
    %cst_5 = arith.constant dense<0xFF800000> : vector<2xf32>
    %5 = vector.multi_reduction <maximumf>, %4, %cst_5 [1] : vector<2x16xf32> to vector<2xf32>
    %6 = vector.shape_cast %5 : vector<2xf32> to vector<2x1xf32>
    %7 = vector.broadcast %6 : vector<2x1xf32> to vector<2x16xf32>
    %8 = arith.subf %4, %7 : vector<2x16xf32>
    %9 = math.exp %8 : vector<2x16xf32>
    %cst_6 = arith.constant dense<0.000000e+00> : vector<2xf32>
    %10 = vector.multi_reduction <add>, %9, %cst_6 [1] : vector<2x16xf32> to vector<2xf32>
    %11 = vector.shape_cast %10 : vector<2xf32> to vector<2x1xf32>
    %12 = tpu.reciprocal %11 : vector<2x1xf32> -> vector<2x1xf32>
    %13 = vector.broadcast %12 : vector<2x1xf32> to vector<2x16xf32>
    %14 = arith.mulf %9, %13 : vector<2x16xf32>
    %15 = vector.shape_cast %14 : vector<2x16xf32> to vector<2x16x1xf32>
    %16 = vector.broadcast %15 : vector<2x16x1xf32> to vector<2x16x32xf32>
    %17 = arith.mulf %0, %16 : vector<2x16x32xf32>
    %cst_7 = arith.constant dense<0.000000e+00> : vector<2x32xf32>
    %18 = vector.multi_reduction <add>, %17, %cst_7 [1] : vector<2x16x32xf32> to vector<2x32xf32>
    %c0_8 = arith.constant 0 : index
    %c0_9 = arith.constant 0 : index
    %c0_10 = arith.constant 0 : index
    %19 = vector.load %arg4[%c0_8, %c0_9, %c0_10] : memref<1x32x8xf32, #tpu.memory_space<vmem>>, vector<1x32x8xf32>
    %20 = vector.shape_cast %19 : vector<1x32x8xf32> to vector<32x8xf32>
    %cst_11 = arith.constant dense<0.000000e+00> : vector<2x8xf32>
    %21 = tpu.matmul %18, %20, %cst_11 {dimension_numbers = #tpu.dot_dimension_numbers<[1], [0], [0], [1], [0, 0, 1, 1], [], []>} : vector<2x32xf32>, vector<32x8xf32>, vector<2x8xf32> -> vector<2x8xf32>
    %22 = vector.shape_cast %14 : vector<2x16xf32> to vector<2x1x16xf32>
    %c0_12 = arith.constant 0 : index
    %23 = arith.index_cast %arg1 : i32 to index
    %c0_13 = arith.constant 0 : index
    %24 = vector.load %arg5[%c0_12, %23, %c0_13] : memref<2x4x16xf32, #tpu.memory_space<vmem>>, vector<2x1x16xf32>
    tpu.vector_store %arg5[%c0_12, %23, %c0_13], %22 {strides = array<i32>} : memref<2x4x16xf32, #tpu.memory_space<vmem>>, vector<2x1x16xf32>,
    %25 = vector.shape_cast %21 : vector<2x8xf32> to vector<2x1x8xf32>
    %c0_14 = arith.constant 0 : index
    %26 = arith.index_cast %arg1 : i32 to index
    %c0_15 = arith.constant 0 : index
    %27 = vector.load %arg6[%c0_14, %26, %c0_15] : memref<2x4x8xf32, #tpu.memory_space<vmem>>, vector<2x1x8xf32>
    tpu.vector_store %arg6[%c0_14, %26, %c0_15], %25 {strides = array<i32>} : memref<2x4x8xf32, #tpu.memory_space<vmem>>, vector<2x1x8xf32>,
    return
  }
  func.func @transform_0(%arg0: i32, %arg1: i32) -> (i32, i32, i32) {
    %c0_i32 = arith.constant 0 : i32
    %c0_i32_0 = arith.constant 0 : i32
    %c0_i32_1 = arith.constant 0 : i32
    return %arg0, %c0_i32, %c0_i32_0 : i32, i32, i32
  }
  func.func @transform_1(%arg0: i32, %arg1: i32) -> (i32, i32, i32) {
    %c0_i32 = arith.constant 0 : i32
    %c0_i32_0 = arith.constant 0 : i32
    %c0_i32_1 = arith.constant 0 : i32
    return %arg1, %c0_i32, %c0_i32_0 : i32, i32, i32
  }
  func.func @transform_2(%arg0: i32, %arg1: i32) -> (i32, i32, i32) {
    %c0_i32 = arith.constant 0 : i32
    %c0_i32_0 = arith.constant 0 : i32
    %c0_i32_1 = arith.constant 0 : i32
    return %arg1, %c0_i32, %c0_i32_0 : i32, i32, i32
  }
  func.func @transform_3(%arg0: i32, %arg1: i32) -> (i32, i32, i32) {
    %c0_i32 = arith.constant 0 : i32
    %c0_i32_0 = arith.constant 0 : i32
    %c0_i32_1 = arith.constant 0 : i32
    return %arg0, %c0_i32, %c0_i32_0 : i32, i32, i32
  }
  func.func @transform_4(%arg0: i32, %arg1: i32) -> (i32, i32, i32) {
    %c0_i32 = arith.constant 0 : i32
    %c0_i32_0 = arith.constant 0 : i32
    %c0_i32_1 = arith.constant 0 : i32
    return %arg0, %c0_i32, %c0_i32_0 : i32, i32, i32
  }
}

</mosaic_0001>

<bundles_post_ra>
// kernel: tpu_custom_call.1
= control target key start
LH: loop header
LB: loop body
LE: loop exit
PB: predicated region body
PF: predicated region fallthrough
CT: control target
= control target key end

     0   :  { %10 = vsyncpa [#allocation3], 0  ;;  %s893_s0 = inlined_call_operand.vmem [shape: f32[2,16,32], index: 0, kind: input, shape index: {}]   ;;  %s894_s1 = inlined_call_operand.vmem [shape: f32[4,1,32], index: 1, kind: input, shape index: {}]   ;;  %s895_s2 = inlined_call_operand.vmem [shape: f32[4,32,8], index: 2, kind: input, shape index: {}]   ;;  %s896_s3 = inlined_call_operand.hbm [shape: f32[2,4,16], index: 3, kind: output, shape index: {0}]   ;;  %s897_s4 = inlined_call_operand.hbm [shape: f32[2,4,8], index: 4, kind: output, shape index: {1}]  }
   0x1   :  { %11 = vsyncpa [#allocation5], 0  ;;  %s758_s15 = smov 0   ;;  %s760_s16 = smov 0  }
   0x2   :  { %s762_s17 = smov 0  }
   0x3 LB: > { %s570_s18 = sadd.s32 4294967295, %s726_s17   ;;  %s26_s19 = sadd.s32 1, %s722_s16  ;;  %s726_s17 = sphi %s762_s17, %s17_s17   ;;  %s722_s16 = sphi %s760_s16, %s900_s16   ;;  %s718_s15 = sphi %s758_s15, %s899_s15  }
   0x4   : > { %p27_p0 = scmp.ge.s32.totalorder %s26_s19, 4  ;;  %p574_p1 = scmp.ge.s32.totalorder %s726_s17, 1 }
   0x5   : > { %p199_p2 = scmp.lt.s32.totalorder %s726_s17, 5 }
   0x6   : > { %s902_s19 = smov (%p27_p0, %s26_s19), 0 }
   0x7   : > { %p200_p3 = pnand %p574_p1, %p199_p2 }
   0x8   : > { %p236_p4 = scmp.lt.s32.totalorder (!%p200_p3), %s718_s15, 3  ;;  %s438_s10 = scalar_lea.vmem (!%p200_p3), [#allocation2], %s718_s15 }
   0x9   : > { %203 = sbr.rel (%p200_p3) target bundleno = 821 (0x335), region = 32  ;;  %p861_p5 = scmp.eq.s32.totalorder (!%p200_p3), %s570_s18, 3 }
   0xa   : > { %s729_s12 = smov (!%p200_p3), [#allocation2]   ;;  %s459_s21 = sshll.u32 (!%p200_p3), %s896_s3, 4  ;;  %s460_s21 = int_to_ptr.hbm [resolvable:$true] %s459_s21 }
   0xb   : > { %s457_s13 = sshll.u32 (!%p200_p3), %s729_s12, 4  ;;  %s730_s22 = smov (!%p200_p3), 64   ;;  %s458_s13 = int_to_ptr.vmem [resolvable:$true] %s457_s13 }
   0xc   : > { %s732_s18 = smov (!%p200_p3), [#allocation4]   ;;  %s476_s27 = sshll.u32 (!%p200_p3), %s897_s4, 4  ;;  %s477_s27 = int_to_ptr.hbm [resolvable:$true] %s476_s27 }
   0xd   : > { %s474_s24 = sshll.u32 (!%p200_p3), %s732_s18, 4  ;;  %s445_s28 = scalar_lea.vmem (!%p200_p3), [#allocation4], %s718_s15  ;;  %s475_s24 = int_to_ptr.vmem [resolvable:$true] %s474_s24 }
   0xe   : > { %s781_s20 = scalar_select %p236_p4, %s718_s15, 3  ;;  %v790_v0 = vld [vmem:[%s893_s0 + $0x10] sm:$0xff]  ;;  %v795_v1 = vld [vmem:[%s893_s0] sm:$0xff]  ;;  %vm258_vm0 = vcmask 261120   ;;  %v802_v5 = vld [vmem:[%s893_s0 + $0x18] sm:$0xff]  ;;  %v275_v13 = vlaneseq  ;;  %vm280_vm1 = vcmask 130112  }
   0xf   : > { %v807_v6 = vld [vmem:[%s893_s0 + $0x8] sm:$0xff]  ;;  %vm285_vm2 = vcmask 1041409   ;;  %vm288_vm3 = vcmask 123904   ;;  %v728_v28 = vmov 0   ;;  %vm439_vm8 = vcmask 122880  }
  0x10   : > { %s238_s23 = scalar_lea.vmem %s894_s1, %s781_s20  ;;  %v815_v16 = vand.u32 127, %v275_v13  ;;  %628 = vset.pattern.permute.xlu1 %v728_v28  ;;  %627 = vset.pattern.permute.xlu0 %v728_v28  ;;  %s584_s6 = sshll.u32 %s781_s20, 5  ;;  %vm446_vm9 = vcmask 57344  }
  0x11   : > { %v629_v2 = vld [vmem:[%s238_s23] ss:$0 sm:$0xff]  ;;  %626 = vset.pattern.permute.xlu2 %v728_v28  ;;  %s243_s9 = scalar_lea.vmem %s895_s2, %s584_s6  ;;  %s731_s23 = smov 4  }
  0x12   : > { %v256_v3 = vmul.f32 %v629_v2, %v790_v0  ;;  %v254_v4 = vmul.f32 %v629_v2, %v795_v1  ;;  %v257_v9 = vmul.f32 %v629_v2, %v802_v5  ;;  %v255_v10 = vmul.f32 %v629_v2, %v807_v6  ;;  %v404_v13 = vld [vmem:[%s243_s9 + $0x18] sm:$0xff] }
  0x13   : > { %v818_v17 = vadd.s32 4294967288, %v815_v16  ;;  %422 = vmatpush.msra.mxu0 %v404_v13 }
  0x14   : > { %v265_v7 = vsel %vm258_vm0, %v256_v3, 0.0  ;;  %v259_v8 = vsel %vm258_vm0, %v254_v4, 0.0  ;;  %v268_v11 = vsel %vm258_vm0, %v257_v9, 0.0  ;;  %v262_v12 = vsel %vm258_vm0, %v255_v10, 0.0 }
  0x15   : > { %266 = vadd.xlane.f32.xlu1 %v265_v7  ;;  %260 = vadd.xlane.f32.xlu0 %v259_v8 }
  0x1d   : > { %269 = vadd.xlane.f32.xlu1 %v268_v11  ;;  %263 = vadd.xlane.f32.xlu0 %v262_v12 }
  0x88   : > { %v267_v14 = vpop.xlane.xlu1 %266  ;;  %v261_v15 = vpop.xlane.xlu0 %260 }
  0x89   : > { %v282_v20 = vperm.slane %v267_v14, %v815_v16  ;;  %v277_v21 = vperm.slane %v261_v15, %v815_v16 }
  0x90   : > { %v270_v18 = vpop.xlane.xlu1 %269  ;;  %v264_v19 = vpop.xlane.xlu0 %263 }
  0x91   : > { %v283_v22 = vperm.slane %v270_v18, %v818_v17  ;;  %v279_v23 = vperm.slane %v264_v19, %v818_v17 }
  0x93   : > { %v281_v24 = vsel %vm280_vm1, %v279_v23, %v277_v21  ;;  %v284_v25 = vsel %vm280_vm1, %v283_v22, %v282_v20 }
  0x94   : > { %v286_v26 = vsel %vm285_vm2, %v284_v25, %v281_v24 }
  0x95   : > { %v289_v27 = vsel %vm288_vm3, %v286_v26, -inf }
  0x96   : > { %290 = vmax.xlane.f32.xlu2 %v289_v27 }
 0x109   : > { %v291_v29 = vpop.xlane.xlu2 %290 }
 0x10a   : > { %v293_v30 = vperm.slane %v291_v29, 0  ;;  %v294_v31 = vperm.slane %v291_v29, 1 }
 0x10c   : > { %v297_v32 = vsub.f32 %v261_v15, %v293_v30  ;;  %v298_v33 = vsub.f32 %v264_v19, %v293_v30  ;;  %v299_v34 = vsub.f32 %v267_v14, %v294_v31  ;;  %v300_v38 = vsub.f32 %v270_v18, %v294_v31  ;;  %v403_v14 = vld [vmem:[%s243_s9 + $0x10] sm:$0xff]  ;;  %v402_v15 = vld [vmem:[%s243_s9 + $0x8] sm:$0xff]  ;;  %v401_v19 = vld [vmem:[%s243_s9] sm:$0xff] }
 0x10d   : > { %423 = vmatpush.msra.mxu0 %v403_v14 }
 0x10e   : > { %v301_v35 = vmul.f32 1.442695, %v297_v32  ;;  %v303_v36 = vmul.f32 1.442695, %v298_v33  ;;  %v305_v37 = vmul.f32 1.442695, %v299_v34 }
 0x10f   : > { %v307_v39 = vmul.f32 1.442695, %v300_v38  ;;  %424 = vmatpush.msra.mxu0 %v402_v15 }
 0x110   : > { %630 = vpow2.f32 %v301_v35 }
 0x111   : > { %632 = vpow2.f32 %v303_v36  ;;  %425 = vmatpush.msra.mxu0 %v401_v19 }
 0x112   : > { %634 = vpow2.f32 %v305_v37 }
 0x113   : > { %636 = vpow2.f32 %v307_v39 }
 0x116   : > { %v631_v40 = vpop.eup %630 }
 0x117   : > { %v633_v41 = vpop.eup %632  ;;  %314 = vperm.xlu2 %626, %v631_v40  }
 0x118   : > { %v635_v42 = vpop.eup %634  ;;  %317 = vperm.xlu0 %627, %v633_v41  }
 0x119   : > { %320 = vperm.xlu1 %628, %v635_v42   ;;  %v637_v43 = vpop.eup %636 }
 0x11f   : > { %323 = vperm.xlu2 %626, %v637_v43  }
 0x171   : > { %v315_v44 = vpop.permute.xlu2 %314 }
 0x172   : > { %v325_v47 = vperm.slane %v315_v44, %v815_v16 }
 0x179   : > { %v324_v45 = vpop.permute.xlu2 %323 }
 0x17a   : > { %v329_v50 = vperm.slane %v324_v45, %v818_v17 }
 0x18a   : > { %v318_v46 = vpop.permute.xlu0 %317 }
 0x18b   : > { %v321_v48 = vpop.permute.xlu1 %320  ;;  %v326_v49 = vperm.slane %v318_v46, %v818_v17 }
 0x18c   : > { %v328_v51 = vperm.slane %v321_v48, %v815_v16 }
 0x18d   : > { %v327_v52 = vsel %vm280_vm1, %v326_v49, %v325_v47 }
 0x18e   : > { %v330_v53 = vsel %vm280_vm1, %v329_v50, %v328_v51 }
 0x18f   : > { %v331_v54 = vsel %vm285_vm2, %v330_v53, %v327_v52 }
 0x190   : > { %v333_v55 = vsel %vm288_vm3, %v331_v54, 0.0 }
 0x191   : > { %334 = vadd.xlane.f32.xlu2 %v333_v55 }
 0x204   : > { %v335_v56 = vpop.xlane.xlu2 %334 }
 0x205   : > { %638 = vrcp.f32 %v335_v56  ;;  %v347_v60 = vand.u32 2147483648, %v335_v56  ;;  %v345_v62 = vand.u32 2147483647, %v335_v56  ;;  %vm341_vm5 = vweird.f32 %v335_v56 }
 0x207   : > { %v348_v2 = vor.u32 1.1754944e-38, %v347_v60  ;;  %vm346_vm7 = vcmp.eq.f32.partialorder %v345_v62, 8.507059e+37 }
 0x20b   : > { %v639_v57 = vpop.eup %638 }
 0x20c   : > { %v337_v58 = vmul.f32 %v639_v57, %v335_v56  ;;  %vm342_vm4 = vweird.f32 %v639_v57 }
 0x20d   : > { %vm343_vm6 = vmor %vm341_vm5, %vm342_vm4 }
 0x20e   : > { %v338_v59 = vsub.f32 1.0, %v337_v58 }
 0x210   : > { %v339_v61 = vmul.f32 %v639_v57, %v338_v59 }
 0x212   : > { %v340_v63 = vadd.f32 %v639_v57, %v339_v61 }
 0x214   : > { %v344_v3 = vsel %vm343_vm6, %v639_v57, %v340_v63 }
 0x215   : > { %v349_v4 = vsel %vm346_vm7, %v348_v2, %v344_v3 }
 0x216   : > { %v352_v7 = vperm.slane %v349_v4, 1  ;;  %v351_v8 = vperm.slane %v349_v4, 0 }
 0x218   : > { %v357_v9 = vmul.f32 %v635_v42, %v352_v7  ;;  %v355_v10 = vmul.f32 %v631_v40, %v351_v8  ;;  %v356_v11 = vmul.f32 %v633_v41, %v351_v8  ;;  %v358_v12 = vmul.f32 %v637_v43, %v352_v7 }
 0x21a   : > { %371 = vperm.xlu0 %627, %v357_v9   ;;  %361 = vperm.xlu1 %628, %v355_v10  }
 0x222   : > { %366 = vperm.xlu1 %628, %v356_v11  }
 0x22a   : > { %376 = vperm.xlu1 %628, %v358_v12  }
 0x28c   : > { %v362_v18 = vpop.permute.xlu1 %361  ;;  %v372_v28 = vpop.permute.xlu0 %371 }
 0x28d   : > { %v379_v20 = vmul.f32 %v362_v18, %v795_v1  ;;  %v430_v22 = vperm.slane %v362_v18, %v815_v16  ;;  %v381_v30 = vmul.f32 %v372_v28, %v790_v0 }
 0x28f   : > { %v383_v25 = vsel %vm258_vm0, %v379_v20, 0.0  ;;  %v392_v35 = vsel %vm258_vm0, %v381_v30, 0.0 }
 0x294   : > { %v367_v21 = vpop.permute.xlu1 %366 }
 0x295   : > { %v380_v23 = vmul.f32 %v367_v21, %v807_v6  ;;  %v431_v24 = vperm.slane %v367_v21, %v818_v17  ;;  %v433_v6 = vperm.slane %v372_v28, %v815_v16 }
 0x297   : > { %v384_v26 = vsel %vm258_vm0, %v380_v23, 0.0  ;;  %v432_v27 = vsel %vm280_vm1, %v431_v24, %v430_v22 }
 0x298   : > { %v385_v29 = vadd.f32 %v384_v26, %v383_v25  ;;  %440 = vst.msk [vmem:[%s438_s10] sm:$0x1] %vm439_vm8, %v432_v27 }
 0x29a   : > { %v386_v1 = vrot.slane %v385_v29, 4 }
 0x29c   : > { %v387_v31 = vadd.f32 %v386_v1, %v385_v29  ;;  %v377_v32 = vpop.permute.xlu1 %376 }
 0x29d   : > { %v382_v33 = vmul.f32 %v377_v32, %v802_v5  ;;  %v434_v34 = vperm.slane %v377_v32, %v818_v17 }
 0x29e   : > { %v388_v38 = vrot.slane %v387_v31, 2 }
 0x29f   : > { %v393_v36 = vsel %vm258_vm0, %v382_v33, 0.0  ;;  %v435_v37 = vsel %vm280_vm1, %v434_v34, %v433_v6 }
 0x2a0   : > { %v394_v39 = vadd.f32 %v393_v36, %v392_v35  ;;  %441 = vst.msk [vmem:[%s438_s10 + $0x4] sm:$0x1] %vm439_vm8, %v435_v37  ;;  %v389_v41 = vadd.f32 %v388_v38, %v387_v31 }
 0x2a1   : > { %586 = dma.vmem_to_hbm [thread:$0]  (%p861_p5), %s458_s13, 128, %s460_s21, [#allocation3], %s730_s22, %s730_s22, %s731_s23  }
 0x2a2   : > { %v395_v0 = vrot.slane %v394_v39, 4  ;;  %v390_v43 = vrot.slane %v389_v41, 1 }
 0x2a4   : > { %v396_v40 = vadd.f32 %v395_v0, %v394_v39  ;;  %v391_v44 = vadd.f32 %v390_v43, %v389_v41 }
 0x2a6   : > { %v397_v42 = vrot.slane %v396_v40, 2 }
 0x2a8   : > { %v398_v16 = vadd.f32 %v397_v42, %v396_v40 }
 0x2aa   : > { %v399_v5 = vrot.slane %v398_v16, 1 }
 0x2ac   : > { %v400_v17 = vadd.f32 %v399_v5, %v398_v16 }
 0x2ae   : > { %v407_v45 = vsel %vm285_vm2, %v400_v17, %v391_v44 }
 0x2af   : > { %577 = vmatmul.msk.f32.vlgmr.msra.gmra.mxu0 %vm258_vm0, %v407_v45 }
 0x32c   : > { %v427_v46 = vpop.f32.mrf.mxu0 }
 0x32d   : > { %v443_v47 = vrot.slane %v427_v46, 1  ;;  %447 = vst.msk [vmem:[%s445_s28] sm:$0x1] %vm446_vm9, %v427_v46 }
 0x32f   : > { %448 = vst.msk [vmem:[%s445_s28 + $0x4] sm:$0x1] %vm446_vm9, %v443_v47 }
 0x330   : > { %588 = dma.vmem_to_hbm [thread:$0]  (%p861_p5), %s475_s24, 128, %s477_s27, [#allocation5], %s730_s22, %s730_s22, %s731_s23  }
 0x331   : > { %709 = dma.done.wait (%p861_p5), [#allocation3], 128  }
 0x332   : > { %711 = vsyncadd (%p861_p5), [#allocation3], 4294967168 }
 0x333   : > { %713 = dma.done.wait (%p861_p5), [#allocation5], 128  }
 0x334   : > { %715 = vsyncadd (%p861_p5), [#allocation5], 4294967168 }
 0x335 PF: > { %s17_s17 = sadd.s32 1, %s726_s17   ;;  %s899_s15 = smov %s722_s16 }
 0x336   : > { %p14_p6 = scmp.ge.s32.totalorder %s17_s17, 6   ;;  %s900_s16 = smov %s902_s19 }
 0x338   :  { %16 = sbr.rel (!%p14_p6) target bundleno = 3 (0x3), region = 77 }
 0x33d   :  { %498 = vsyncpa [#allocation3], 1 }
 0x33e   :  { %500 = vsyncpa [#allocation3 + $0x1], 1 }
 0x33f   :  { %501 = vsyncpa [#allocation5], 1 }

</bundles_post_ra>
